<compile_context>
chip_gen: v7x
topology: tpu7x:2x2x1
jax: 0.10.0
libtpu: 0.0.40
codegen_flags: <defaults>
</compile_context>

<pallas_src>
import functools
import math

import jax
import jax.numpy as jnp
from jax import lax
from jax.experimental import pallas as pl
from jax.experimental.pallas import tpu as pltpu

LANES = 128     # TPU lane width (last dim of every vreg)
HIDDEN = 10     # hidden_output_features of CosineNet


def cosine_net_kernel(x_ref, w1_ref, b1_ref, w2_ref, b2_ref, o_ref, *, chunk):
    """One (tile_rows, 128) lane-dense batch tile.

    x_ref / o_ref : (tile_rows, 128) f32 in VMEM
    w1_ref, b1_ref, w2_ref : (HIDDEN,) f32 in SMEM
    b2_ref : (1,) f32 in SMEM
    """
    n_chunks = x_ref.shape[0] // chunk

    def body(c, carry):
        r = pl.multiple_of(c * chunk, chunk)
        x = x_ref[pl.ds(r, chunk), :]                          # (chunk, 128)
        acc = jnp.zeros_like(x)
        # Layer 1 (1->10) + ReLU + Layer 2 (10->1), fused per hidden unit:
        # out = sum_j relu(x * w1[j] + b1[j]) * w2[j] + b2
        for j in range(HIDDEN):                                # static unroll, VPU FMAs
            h = jnp.maximum(x * w1_ref[j] + b1_ref[j], 0.0)
            acc = acc + h * w2_ref[j]
        o_ref[pl.ds(r, chunk), :] = acc + b2_ref[0]
        return carry

    lax.fori_loop(0, n_chunks, body, 0)


def _round_up(n, m):
    return ((n + m - 1) // m) * m


def cosine_net_forward(x, w1, b1, w2, b2, *, tile_rows=1024):
    """x: (B, 1) float32 -> (B, 1) float32 (matches CosineNet.forward)."""
    B = x.shape[0]
    flat = x.reshape(-1).astype(jnp.float32)

    rows_needed = max(1, _round_up(B, LANES) // LANES)
    # Block rows must be a multiple of 8 (f32 sublane tiling); cap at the data size.
    tile_rows = max(8, min(_round_up(tile_rows, 8), _round_up(rows_needed, 8)))
    rows_padded = _round_up(rows_needed, tile_rows)

    n_pad = rows_padded * LANES - B
    if n_pad:
        flat = jnp.pad(flat, (0, n_pad))          # tail tile padded in the wrapper
    x2d = flat.reshape(rows_padded, LANES)

    grid = (rows_padded // tile_rows,)
    chunk = 64 if tile_rows % 64 == 0 else 8      # bounds vreg pressure per inner step

    smem = pl.BlockSpec(memory_space=pltpu.MemorySpace.SMEM)
    out2d = pl.pallas_call(
        functools.partial(cosine_net_kernel, chunk=chunk),
        out_shape=jax.ShapeDtypeStruct((rows_padded, LANES), jnp.float32),
        grid=grid,
        in_specs=[
            pl.BlockSpec((tile_rows, LANES), lambda i: (i, 0)),   # batch tile (pipelined)
            smem, smem, smem, smem,                               # tiny weights, resident
        ],
        out_specs=pl.BlockSpec((tile_rows, LANES), lambda i: (i, 0)),
        compiler_params=pltpu.CompilerParams(
            dimension_semantics=("parallel",),    # batch tiles shard across TCs on v7x
        ),
    )(x2d, w1, b1, w2, b2)

    return out2d.reshape(-1)[:B].reshape(B, 1)


def init_params(key):
    """Deterministic init mimicking torch.nn.Linear's default uniform init."""
    k1, k2, k3, k4 = jax.random.split(key, 4)
    bound1 = 1.0 / math.sqrt(1.0)       # Linear(1, 10)
    bound2 = 1.0 / math.sqrt(HIDDEN)    # Linear(10, 1)
    w1 = jax.random.uniform(k1, (HIDDEN,), jnp.float32, -bound1, bound1)
    b1 = jax.random.uniform(k2, (HIDDEN,), jnp.float32, -bound1, bound1)
    w2 = jax.random.uniform(k3, (HIDDEN,), jnp.float32, -bound2, bound2)
    b2 = jax.random.uniform(k4, (1,), jnp.float32, -bound2, bound2)
    return w1, b1, w2, b2


def reference_forward(x, w1, b1, w2, b2):
    h = jnp.maximum(x * w1[None, :] + b1[None, :], 0.0)   # (B, 10)
    return h @ w2[:, None] + b2[None, :]                   # (B, 1)


if __name__ == "__main__":
    key = jax.random.PRNGKey(0)
    k_params, k_x = jax.random.split(key)
    w1, b1, w2, b2 = init_params(k_params)

    # Case 1: ragged batch (not a multiple of 128) + tiny tile -> 3-step grid,
    # exercises the pad/slice tail path and the grid pipelining.
    B1 = 3000
    x1 = jax.random.uniform(k_x, (B1, 1), jnp.float32, -math.pi, math.pi)
    out1 = jax.block_until_ready(cosine_net_forward(x1, w1, b1, w2, b2, tile_rows=8))
    ref1 = reference_forward(x1, w1, b1, w2, b2)
    assert out1.shape == (B1, 1)
    assert jnp.allclose(out1, ref1, atol=1e-5, rtol=1e-5)

    # Case 2: 128-aligned batch with the default (large) tile -> chunked inner loop.
    B2 = 16384
    x2 = jax.random.uniform(jax.random.PRNGKey(1), (B2, 1), jnp.float32,
                            -math.pi, math.pi)
    out2 = jax.block_until_ready(cosine_net_forward(x2, w1, b1, w2, b2))
    ref2 = reference_forward(x2, w1, b1, w2, b2)
    assert out2.shape == (B2, 1)
    assert jnp.allclose(out2, ref2, atol=1e-5, rtol=1e-5)

    # TODO(synk): training loop (Adam/MSELoss) and TensorBoard writer are host-side
    # utilities in the PyTorch module; only the forward pass is implemented here.
    print("KERNEL_OK")
</pallas_src>

<mosaic_0001>
module attributes {stable_mosaic.version = 11 : i64} {
  func.func @cosine_net_kernel(%arg0: i32, %arg1: memref<8x128xf32, #tpu.memory_space<vmem>>, %arg2: memref<10xf32, #tpu.memory_space<smem>>, %arg3: memref<10xf32, #tpu.memory_space<smem>>, %arg4: memref<10xf32, #tpu.memory_space<smem>>, %arg5: memref<1xf32, #tpu.memory_space<smem>>, %arg6: memref<8x128xf32, #tpu.memory_space<vmem>>) attributes {dimension_semantics = [#tpu.dimension_semantics<parallel>], iteration_bounds = array<i64: 3>, scalar_prefetch = 0 : i64, scratch_operands = 0 : i64, tpu.core_type = #tpu.core_type<tc>, window_params = [{transform_indices = @transform_0, window_bounds = array<i64: 8, 128>}, {transform_indices = @transform_1, window_bounds = array<i64: 10>}, {transform_indices = @transform_2, window_bounds = array<i64: 10>}, {transform_indices = @transform_3, window_bounds = array<i64: 10>}, {transform_indices = @transform_4, window_bounds = array<i64: 1>}, {transform_indices = @transform_5, window_bounds = array<i64: 8, 128>}]} {
    %c0_i32 = arith.constant 0 : i32
    %c8_i32 = arith.constant 8 : i32
    %0 = arith.muli %c0_i32, %c8_i32 : i32
    %1 = tpu.assume_multiple %0, 8 : i32
    %2 = arith.index_cast %1 : i32 to index
    %c0 = arith.constant 0 : index
    %3 = vector.load %arg1[%2, %c0] : memref<8x128xf32, #tpu.memory_space<vmem>>, vector<8x128xf32>
    %cst = arith.constant 0.000000e+00 : f32
    %4 = vector.broadcast %cst : f32 to vector<8x128xf32>
    %c0_0 = arith.constant 0 : index
    %5 = memref.load %arg2[%c0_0] : memref<10xf32, #tpu.memory_space<smem>>
    %6 = vector.broadcast %5 : f32 to vector<8x128xf32>
    %7 = arith.mulf %3, %6 : vector<8x128xf32>
    %c0_1 = arith.constant 0 : index
    %8 = memref.load %arg3[%c0_1] : memref<10xf32, #tpu.memory_space<smem>>
    %9 = vector.broadcast %8 : f32 to vector<8x128xf32>
    %10 = arith.addf %7, %9 : vector<8x128xf32>
    %cst_2 = arith.constant 0.000000e+00 : f32
    %11 = vector.broadcast %cst_2 : f32 to vector<8x128xf32>
    %12 = arith.maximumf %10, %11 : vector<8x128xf32>
    %c0_3 = arith.constant 0 : index
    %13 = memref.load %arg4[%c0_3] : memref<10xf32, #tpu.memory_space<smem>>
    %14 = vector.broadcast %13 : f32 to vector<8x128xf32>
    %15 = arith.mulf %12, %14 : vector<8x128xf32>
    %16 = arith.addf %4, %15 : vector<8x128xf32>
    %c1 = arith.constant 1 : index
    %17 = memref.load %arg2[%c1] : memref<10xf32, #tpu.memory_space<smem>>
    %18 = vector.broadcast %17 : f32 to vector<8x128xf32>
    %19 = arith.mulf %3, %18 : vector<8x128xf32>
    %c1_4 = arith.constant 1 : index
    %20 = memref.load %arg3[%c1_4] : memref<10xf32, #tpu.memory_space<smem>>
    %21 = vector.broadcast %20 : f32 to vector<8x128xf32>
    %22 = arith.addf %19, %21 : vector<8x128xf32>
    %cst_5 = arith.constant 0.000000e+00 : f32
    %23 = vector.broadcast %cst_5 : f32 to vector<8x128xf32>
    %24 = arith.maximumf %22, %23 : vector<8x128xf32>
    %c1_6 = arith.constant 1 : index
    %25 = memref.load %arg4[%c1_6] : memref<10xf32, #tpu.memory_space<smem>>
    %26 = vector.broadcast %25 : f32 to vector<8x128xf32>
    %27 = arith.mulf %24, %26 : vector<8x128xf32>
    %28 = arith.addf %16, %27 : vector<8x128xf32>
    %c2 = arith.constant 2 : index
    %29 = memref.load %arg2[%c2] : memref<10xf32, #tpu.memory_space<smem>>
    %30 = vector.broadcast %29 : f32 to vector<8x128xf32>
    %31 = arith.mulf %3, %30 : vector<8x128xf32>
    %c2_7 = arith.constant 2 : index
    %32 = memref.load %arg3[%c2_7] : memref<10xf32, #tpu.memory_space<smem>>
    %33 = vector.broadcast %32 : f32 to vector<8x128xf32>
    %34 = arith.addf %31, %33 : vector<8x128xf32>
    %cst_8 = arith.constant 0.000000e+00 : f32
    %35 = vector.broadcast %cst_8 : f32 to vector<8x128xf32>
    %36 = arith.maximumf %34, %35 : vector<8x128xf32>
    %c2_9 = arith.constant 2 : index
    %37 = memref.load %arg4[%c2_9] : memref<10xf32, #tpu.memory_space<smem>>
    %38 = vector.broadcast %37 : f32 to vector<8x128xf32>
    %39 = arith.mulf %36, %38 : vector<8x128xf32>
    %40 = arith.addf %28, %39 : vector<8x128xf32>
    %c3 = arith.constant 3 : index
    %41 = memref.load %arg2[%c3] : memref<10xf32, #tpu.memory_space<smem>>
    %42 = vector.broadcast %41 : f32 to vector<8x128xf32>
    %43 = arith.mulf %3, %42 : vector<8x128xf32>
    %c3_10 = arith.constant 3 : index
    %44 = memref.load %arg3[%c3_10] : memref<10xf32, #tpu.memory_space<smem>>
    %45 = vector.broadcast %44 : f32 to vector<8x128xf32>
    %46 = arith.addf %43, %45 : vector<8x128xf32>
    %cst_11 = arith.constant 0.000000e+00 : f32
    %47 = vector.broadcast %cst_11 : f32 to vector<8x128xf32>
    %48 = arith.maximumf %46, %47 : vector<8x128xf32>
    %c3_12 = arith.constant 3 : index
    %49 = memref.load %arg4[%c3_12] : memref<10xf32, #tpu.memory_space<smem>>
    %50 = vector.broadcast %49 : f32 to vector<8x128xf32>
    %51 = arith.mulf %48, %50 : vector<8x128xf32>
    %52 = arith.addf %40, %51 : vector<8x128xf32>
    %c4 = arith.constant 4 : index
    %53 = memref.load %arg2[%c4] : memref<10xf32, #tpu.memory_space<smem>>
    %54 = vector.broadcast %53 : f32 to vector<8x128xf32>
    %55 = arith.mulf %3, %54 : vector<8x128xf32>
    %c4_13 = arith.constant 4 : index
    %56 = memref.load %arg3[%c4_13] : memref<10xf32, #tpu.memory_space<smem>>
    %57 = vector.broadcast %56 : f32 to vector<8x128xf32>
    %58 = arith.addf %55, %57 : vector<8x128xf32>
    %cst_14 = arith.constant 0.000000e+00 : f32
    %59 = vector.broadcast %cst_14 : f32 to vector<8x128xf32>
    %60 = arith.maximumf %58, %59 : vector<8x128xf32>
    %c4_15 = arith.constant 4 : index
    %61 = memref.load %arg4[%c4_15] : memref<10xf32, #tpu.memory_space<smem>>
    %62 = vector.broadcast %61 : f32 to vector<8x128xf32>
    %63 = arith.mulf %60, %62 : vector<8x128xf32>
    %64 = arith.addf %52, %63 : vector<8x128xf32>
    %c5 = arith.constant 5 : index
    %65 = memref.load %arg2[%c5] : memref<10xf32, #tpu.memory_space<smem>>
    %66 = vector.broadcast %65 : f32 to vector<8x128xf32>
    %67 = arith.mulf %3, %66 : vector<8x128xf32>
    %c5_16 = arith.constant 5 : index
    %68 = memref.load %arg3[%c5_16] : memref<10xf32, #tpu.memory_space<smem>>
    %69 = vector.broadcast %68 : f32 to vector<8x128xf32>
    %70 = arith.addf %67, %69 : vector<8x128xf32>
    %cst_17 = arith.constant 0.000000e+00 : f32
    %71 = vector.broadcast %cst_17 : f32 to vector<8x128xf32>
    %72 = arith.maximumf %70, %71 : vector<8x128xf32>
    %c5_18 = arith.constant 5 : index
    %73 = memref.load %arg4[%c5_18] : memref<10xf32, #tpu.memory_space<smem>>
    %74 = vector.broadcast %73 : f32 to vector<8x128xf32>
    %75 = arith.mulf %72, %74 : vector<8x128xf32>
    %76 = arith.addf %64, %75 : vector<8x128xf32>
    %c6 = arith.constant 6 : index
    %77 = memref.load %arg2[%c6] : memref<10xf32, #tpu.memory_space<smem>>
    %78 = vector.broadcast %77 : f32 to vector<8x128xf32>
    %79 = arith.mulf %3, %78 : vector<8x128xf32>
    %c6_19 = arith.constant 6 : index
    %80 = memref.load %arg3[%c6_19] : memref<10xf32, #tpu.memory_space<smem>>
    %81 = vector.broadcast %80 : f32 to vector<8x128xf32>
    %82 = arith.addf %79, %81 : vector<8x128xf32>
    %cst_20 = arith.constant 0.000000e+00 : f32
    %83 = vector.broadcast %cst_20 : f32 to vector<8x128xf32>
    %84 = arith.maximumf %82, %83 : vector<8x128xf32>
    %c6_21 = arith.constant 6 : index
    %85 = memref.load %arg4[%c6_21] : memref<10xf32, #tpu.memory_space<smem>>
    %86 = vector.broadcast %85 : f32 to vector<8x128xf32>
    %87 = arith.mulf %84, %86 : vector<8x128xf32>
    %88 = arith.addf %76, %87 : vector<8x128xf32>
    %c7 = arith.constant 7 : index
    %89 = memref.load %arg2[%c7] : memref<10xf32, #tpu.memory_space<smem>>
    %90 = vector.broadcast %89 : f32 to vector<8x128xf32>
    %91 = arith.mulf %3, %90 : vector<8x128xf32>
    %c7_22 = arith.constant 7 : index
    %92 = memref.load %arg3[%c7_22] : memref<10xf32, #tpu.memory_space<smem>>
    %93 = vector.broadcast %92 : f32 to vector<8x128xf32>
    %94 = arith.addf %91, %93 : vector<8x128xf32>
    %cst_23 = arith.constant 0.000000e+00 : f32
    %95 = vector.broadcast %cst_23 : f32 to vector<8x128xf32>
    %96 = arith.maximumf %94, %95 : vector<8x128xf32>
    %c7_24 = arith.constant 7 : index
    %97 = memref.load %arg4[%c7_24] : memref<10xf32, #tpu.memory_space<smem>>
    %98 = vector.broadcast %97 : f32 to vector<8x128xf32>
    %99 = arith.mulf %96, %98 : vector<8x128xf32>
    %100 = arith.addf %88, %99 : vector<8x128xf32>
    %c8 = arith.constant 8 : index
    %101 = memref.load %arg2[%c8] : memref<10xf32, #tpu.memory_space<smem>>
    %102 = vector.broadcast %101 : f32 to vector<8x128xf32>
    %103 = arith.mulf %3, %102 : vector<8x128xf32>
    %c8_25 = arith.constant 8 : index
    %104 = memref.load %arg3[%c8_25] : memref<10xf32, #tpu.memory_space<smem>>
    %105 = vector.broadcast %104 : f32 to vector<8x128xf32>
    %106 = arith.addf %103, %105 : vector<8x128xf32>
    %cst_26 = arith.constant 0.000000e+00 : f32
    %107 = vector.broadcast %cst_26 : f32 to vector<8x128xf32>
    %108 = arith.maximumf %106, %107 : vector<8x128xf32>
    %c8_27 = arith.constant 8 : index
    %109 = memref.load %arg4[%c8_27] : memref<10xf32, #tpu.memory_space<smem>>
    %110 = vector.broadcast %109 : f32 to vector<8x128xf32>
    %111 = arith.mulf %108, %110 : vector<8x128xf32>
    %112 = arith.addf %100, %111 : vector<8x128xf32>
    %c9 = arith.constant 9 : index
    %113 = memref.load %arg2[%c9] : memref<10xf32, #tpu.memory_space<smem>>
    %114 = vector.broadcast %113 : f32 to vector<8x128xf32>
    %115 = arith.mulf %3, %114 : vector<8x128xf32>
    %c9_28 = arith.constant 9 : index
    %116 = memref.load %arg3[%c9_28] : memref<10xf32, #tpu.memory_space<smem>>
    %117 = vector.broadcast %116 : f32 to vector<8x128xf32>
    %118 = arith.addf %115, %117 : vector<8x128xf32>
    %cst_29 = arith.constant 0.000000e+00 : f32
    %119 = vector.broadcast %cst_29 : f32 to vector<8x128xf32>
    %120 = arith.maximumf %118, %119 : vector<8x128xf32>
    %c9_30 = arith.constant 9 : index
    %121 = memref.load %arg4[%c9_30] : memref<10xf32, #tpu.memory_space<smem>>
    %122 = vector.broadcast %121 : f32 to vector<8x128xf32>
    %123 = arith.mulf %120, %122 : vector<8x128xf32>
    %124 = arith.addf %112, %123 : vector<8x128xf32>
    %c0_31 = arith.constant 0 : index
    %125 = memref.load %arg5[%c0_31] : memref<1xf32, #tpu.memory_space<smem>>
    %126 = vector.broadcast %125 : f32 to vector<8x128xf32>
    %127 = arith.addf %124, %126 : vector<8x128xf32>
    %128 = arith.index_cast %1 : i32 to index
    %c0_32 = arith.constant 0 : index
    %129 = vector.load %arg6[%128, %c0_32] : memref<8x128xf32, #tpu.memory_space<vmem>>, vector<8x128xf32>
    tpu.vector_store %arg6[%128, %c0_32], %127 {strides = array<i32>} : memref<8x128xf32, #tpu.memory_space<vmem>>, vector<8x128xf32>,
    %c1_i32 = arith.constant 1 : i32
    return
  }
  func.func @transform_0(%arg0: i32) -> (i32, i32) {
    %c0_i32 = arith.constant 0 : i32
    %c0_i32_0 = arith.constant 0 : i32
    return %arg0, %c0_i32 : i32, i32
  }
  func.func @transform_1(%arg0: i32) -> i32 {
    %c0_i32 = arith.constant 0 : i32
    %c0_i32_0 = arith.constant 0 : i32
    return %c0_i32 : i32
  }
  func.func @transform_2(%arg0: i32) -> i32 {
    %c0_i32 = arith.constant 0 : i32
    %c0_i32_0 = arith.constant 0 : i32
    return %c0_i32 : i32
  }
  func.func @transform_3(%arg0: i32) -> i32 {
    %c0_i32 = arith.constant 0 : i32
    %c0_i32_0 = arith.constant 0 : i32
    return %c0_i32 : i32
  }
  func.func @transform_4(%arg0: i32) -> i32 {
    %c0_i32 = arith.constant 0 : i32
    %c0_i32_0 = arith.constant 0 : i32
    return %c0_i32 : i32
  }
  func.func @transform_5(%arg0: i32) -> (i32, i32) {
    %c0_i32 = arith.constant 0 : i32
    %c0_i32_0 = arith.constant 0 : i32
    return %arg0, %c0_i32 : i32, i32
  }
}

</mosaic_0001>

<bundles_post_ra>
// kernel: tpu_custom_call.1
= control target key start
LH: loop header
LB: loop body
LE: loop exit
PB: predicated region body
PF: predicated region fallthrough
CT: control target
= control target key end

     0   :  { %s1120_s0 = inlined_call_operand.hbm [shape: f32[24,128], index: 0, kind: input, shape index: {}]   ;;  %s1121_s1 = inlined_call_operand.vmem [shape: f32[10], index: 1, kind: input, shape index: {}]   ;;  %s1122_s2 = inlined_call_operand.vmem [shape: f32[10], index: 2, kind: input, shape index: {}]   ;;  %s1123_s3 = inlined_call_operand.vmem [shape: f32[10], index: 3, kind: input, shape index: {}]   ;;  %s1124_s4 = inlined_call_operand.<no memory space> [shape: f32[1], index: 4, kind: input, shape index: {}]   ;;  %s1125_s5 = inlined_call_operand.hbm [shape: f32[24,128], index: 5, kind: output, shape index: {}]  }
   0x1   :  { %1130 = sst [smem:[#allocation16_spill]] %s1120_s0 }
   0x2   :  { %10 = sst [smem:[#allocation2]] %s1124_s4 }
   0x3   :  { %11 = vsyncpa [#allocation4], 0 }
   0x4   :  { %13 = vsyncpa [#allocation4 + $0x1], 0 }
   0x5   :  { %14 = vsyncpa [#allocation6], 0 }
   0x6   :  { %15 = vsyncpa [#allocation9], 0 }
   0x7   :  { %16 = vsyncpa [#allocation5], 0 }
   0x8   :  { %18 = vsyncpa [#allocation5 + $0x1], 0  ;;  %s821_s20 = smov 0   ;;  %s823_s21 = smov 0  }
   0x9   :  { %s825_s22 = smov 0   ;;  %s827_s23 = smov 0  }
   0xa LB: > { %s842_s4 = sadd.s32 4294967295, %s781_s23   ;;  %s510_s24 = sadd.s32 4294967294, %s781_s23   ;;  %s781_s23 = sphi %s827_s23, %s1150_s23   ;;  %s777_s22 = sphi %s825_s22, %s1149_s22   ;;  %s773_s21 = sphi %s823_s21, %s1148_s21   ;;  %s769_s20 = sphi %s821_s20, %s1147_s20  }
   0xb   : > { %p44_p0 = scmp.ne.s32.totalorder %s773_s21, %s769_s20  ;;  %p1126_p1 = scmp.eq.s32.totalorder %s842_s4, 0 }
   0xc   : > { %p158_p3 = scmp.eq.s32.totalorder %s510_s24, 2  ;;  %p511_p5 = scmp.ge.s32.totalorder %s781_s23, 1 }
   0xd   : > { %p851_p4 = por %p1126_p1, %p44_p0  ;;  %p165_p7 = scmp.lt.s32.totalorder %s781_s23, 4 }
   0xe   : > { %p856_p6 = por %p158_p3, %p44_p0  ;;  %s189_s29 = sshll.u32 %s1122_s2, 4  ;;  %s190_s29 = int_to_ptr.vmem [resolvable:$true] %s189_s29 }
   0xf   : > { %s1131_s25 = scalar_select %p851_p4, 1, 0 }
  0x10   : > { %s1132_s26 = scalar_select %p856_p6, 1, 0 }
  0x11   : > { %p864_p8 = pnand %p511_p5, %p165_p7  ;;  %s178_s8 = sshll.u32 %s1121_s1, 4  ;;  %s179_s8 = int_to_ptr.vmem [resolvable:$true] %s178_s8 }
  0x12   : > { %s200_s12 = sshll.u32 %s1123_s3, 4  ;;  %s632_s13 = scalar_lea.vmem %s190_s29, 16  ;;  %s882_s12 = int_to_ptr.vmem [resolvable:$true] %s200_s12 }
  0x13   : > { %s1133_s30 = scalar_select %p864_p8, 1, 0 }
  0x14   : > { %p571_p9 = pneg %p864_p8  ;;  %p633_p11 = scmp.ne.s32.totalorder %s190_s29, %s632_s13 }
  0x15   : > { %p640_p3 = scmp.lt.s32.totalorder %s190_s29, %s190_s29  ;;  %p641_p5 = scmp.lt.s32.totalorder %s632_s13, %s632_s13 }
  0x16   : > { %p875_p10 = pnand %p571_p9, %p1126_p1 }
  0x17   : > { %p642_p7 = por %p641_p5, %p640_p3 }
  0x18   : > { %p634_p12 = pneg %p875_p10 }
  0x1a   : > { %p635_p13 = pnand %p634_p12, %p633_p11 }
  0x1c   : > { %p636_p0 = pneg %p635_p13 }
  0x1e   : > { %p643_p9 = pnand %p642_p7, %p636_p0 }
  0x20   : > { %646 = shalt.err (!%p643_p9)
}
  0x21   : > { %s783_s14 = smov [#allocation8]   ;;  %s647_s15 = scalar_lea.vmem %s179_s8, 16 }
  0x22   : > { %577 = dma.vmem_to_smem (!%p875_p10), %s190_s29, 16, %s783_s14, [#allocation9]  }
  0x23   : > { %p648_p1 = scmp.ne.s32.totalorder %s179_s8, %s647_s15  ;;  %p655_p4 = scmp.lt.s32.totalorder %s179_s8, %s179_s8 }
  0x24   : > { %p656_p8 = scmp.lt.s32.totalorder %s647_s15, %s647_s15 }
  0x25   : > { %p650_p2 = pnand %p648_p1, %p634_p12 }
  0x26   : > { %p657_p11 = por %p656_p8, %p655_p4 }
  0x27   : > { %p651_p6 = pneg %p650_p2 }
  0x29   : > { %p658_p13 = pnand %p657_p11, %p651_p6 }
  0x2b   : > { %661 = shalt.err (!%p658_p13)
}
  0x2c   : > { %s784_s16 = smov [#allocation7]   ;;  %s662_s17 = scalar_lea.vmem %s882_s12, 16 }
  0x2d   : > { %574 = dma.vmem_to_smem (!%p875_p10), %s179_s8, 16, %s784_s16, [#allocation6]  }
  0x2e   : > { %p663_p0 = scmp.ne.s32.totalorder %s882_s12, %s662_s17  ;;  %p670_p2 = scmp.lt.s32.totalorder %s882_s12, %s882_s12 }
  0x2f   : > { %p671_p5 = scmp.lt.s32.totalorder %s662_s17, %s662_s17 }
  0x30   : > { %p665_p3 = pnand %p663_p0, %p634_p12 }
  0x31   : > { %p672_p4 = por %p671_p5, %p670_p2 }
  0x32   : > { %p666_p1 = pneg %p665_p3 }
  0x34   : > { %p673_p6 = pnand %p672_p4, %p666_p1 }
  0x36   : > { %676 = shalt.err (!%p673_p6)
}
  0x37   : > { %s785_s18 = smov [#allocation10]   ;;  %s907_s19 = sadd.s32 1, %s781_s23  }
  0x38   : > { %580 = dma.vmem_to_smem (!%p875_p10), %s882_s12, 16, %s785_s18, [#allocation9]  }
  0x39   : > { %s28_s24 = ssub.s32 %s781_s23, %s907_s19  ;;  %s31_s27 = sadd.s32 1, %s777_s22 }
  0x3a   : > { %p29_p8 = scmp.eq.s32.totalorder %s28_s24, 0  ;;  %p38_p12 = scmp.ne.s32.totalorder %s777_s22, %s773_s21 }
  0x3b   : > { %p39_p7 = scmp.eq.s32.totalorder %s781_s23, 0  ;;  %p592_p9 = scmp.lt.s32.totalorder %s781_s23, 3 }
  0x3c   : > { %s917_s28 = scalar_select %p29_p8, %s777_s22, %s31_s27  }
  0x3d   : > { %p40_p11 = por %p39_p7, %p38_p12  ;;  %p1135_p13 = scmp.eq.s32.totalorder %s842_s4, 2 }
  0x3e   : > { %s214_s6 = sand.u32 1, %s777_s22   ;;  %s517_s7 = sshll.u32 %s781_s23, 7 }
  0x3f   : > { %p921_p0 = por %p1135_p13, %p38_p12  ;;  %s516_s8 = sshll.u32 %s214_s6, 3 }
  0x40   : > { %s1137_s0 = sld [smem:[#allocation16_spill]]  ;;  %s218_s12 = scalar_lea.vmem [#allocation3], %s516_s8 }
  0x41   : > { %s225_s13 = sshll.u32 %s218_s12, 4  ;;  %p932_p10 = pnand %p592_p9, %p40_p11  ;;  %s936_s13 = int_to_ptr.vmem [resolvable:$true] %s225_s13 }
  0x42   : > { %s215_s15 = scalar_lea.sflag [#allocation4], %s214_s6 }
  0x43   : > { %p679_p1 = pneg %p932_p10 }
  0x46   : > { %s930_s11 = scalar_lea.hbm %s1137_s0, %s517_s7  ;;  %s682_s24 = scalar_lea.hbm %s1137_s0, 384 }
  0x47   : > { %s677_s16 = scalar_lea.hbm %s930_s11, 128  ;;  %p683_p4 = scmp.lt.u32.totalorder %s930_s11, %s1137_s0 }
  0x48   : > { %p678_p3 = scmp.ne.s32.totalorder %s930_s11, %s677_s16  ;;  %p684_p6 = scmp.lt.u32.totalorder %s682_s24, %s677_s16 }
  0x49   : > { %p686_p12 = scmp.lt.u32.totalorder %s677_s16, %s930_s11 }
  0x4a   : > { %p680_p2 = pnand %p679_p1, %p678_p3  ;;  %p685_p8 = por %p684_p6, %p683_p4 }
  0x4c   : > { %p681_p5 = pneg %p680_p2  ;;  %p687_p7 = por %p686_p12, %p685_p8 }
  0x4e   : > { %p688_p9 = pnand %p687_p7, %p681_p5 }
  0x50   : > { %691 = shalt.err (!%p688_p9)
}
  0x51   : > { %s692_s6 = scalar_lea.vmem %s936_s13, 128  ;;  %s786_s8 = smov [#allocation3]  }
  0x52   : > { %p693_p11 = scmp.ne.s32.totalorder %s936_s13, %s692_s6  ;;  %s697_s9 = sshll.u32 %s786_s8, 4  ;;  %s698_s9 = int_to_ptr.vmem [resolvable:$false] %s697_s9 }
  0x53   : > { %s699_s10 = scalar_lea.vmem %s698_s9, 256  ;;  %p700_p2 = scmp.lt.s32.totalorder %s936_s13, %s698_s9 }
  0x54   : > { %p695_p13 = pnand %p693_p11, %p679_p1  ;;  %p701_p4 = scmp.lt.s32.totalorder %s699_s10, %s692_s6 }
  0x56   : > { %p696_p3 = pneg %p695_p13  ;;  %p702_p6 = por %p701_p4, %p700_p2 }
  0x58   : > { %p703_p8 = pnand %p702_p6, %p696_p3 }
  0x5a   : > { %706 = shalt.err (!%p703_p8)
}
  0x5b   : > { %584 = dma.hbm_to_vmem [thread:$0]  (!%p932_p10), %s930_s11, 128, %s936_s13, %s215_s15  }
  0x5c   : > { %p1139_p5 = scmp.ne.s32.totalorder %s1133_s30, 0 }
  0x5d   : > { %s966_s12 = sand.u32 (!%p1139_p5), 1, %s773_s21   ;;  %p1140_p1 = scmp.ne.s32.totalorder (!%p1139_p5), %s1131_s25, 0 }
  0x5e   : > { %234 = sbr.rel (%p1139_p5) target bundleno = 161 (0xa1), region = 40  ;;  %s1129_s16 = sshll.u32 (!%p1139_p5), %s966_s12, 3 }
  0x5f   : > { %s237_s17 = scalar_lea.sflag (!%p1139_p5), [#allocation4], %s966_s12  ;;  %s240_s18 = scalar_lea.vmem (!%p1139_p5), [#allocation3], %s1129_s16 }
  0x65   : > { %752 = dma.done.wait (%p1140_p1), %s237_s17, 128  }
  0x66   : > { %754 = vsyncadd (%p1140_p1), %s237_s17, 4294967168  ;;  %p1141_p10 = scmp.eq.s32.totalorder %s842_s4, 0 }
  0x68   : > { %756 = dma.done.wait (%p1141_p10), [#allocation6], 16   ;;  %p1142_p12 = pmov %p1141_p10 }
  0x69   : > { %p1143_p7 = pmov %p1141_p10 }
  0x6a   : > { %758 = vsyncadd (%p1142_p12), [#allocation6], 4294967280 }
  0x6b   : > { %760 = dma.done.wait (%p1143_p7), [#allocation9], 32   ;;  %p1144_p9 = pmov %p1143_p7 }
  0x6d   : > { %762 = vsyncadd (%p1144_p9), [#allocation9], 4294967264 }
  0x6e   : > { %257 = sfence }
  0x6f   : > { %s281_s30 = sld [smem:[#allocation7]]  ;;  %s524_s14 = sld [smem:[#allocation7 + $0x1]]  ;;  %v988_v0 = vld [vmem:[%s240_s18] sm:$0xff] }
  0x70   : > { %s284_s11 = sld [smem:[#allocation8]]  ;;  %s525_s25 = sld [smem:[#allocation8 + $0x1]] }
  0x71   : > { %s984_s13 = sld [smem:[#allocation10]]  ;;  %s986_s15 = sld [smem:[#allocation10 + $0x1]] }
  0x72   : > { %s527_s24 = sld [smem:[#allocation7 + $0x2]]  ;;  %s994_s6 = sld [smem:[#allocation7 + $0x3]] }
  0x73   : > { %s990_s27 = sld [smem:[#allocation8 + $0x2]]  ;;  %s996_s8 = sld [smem:[#allocation8 + $0x3]] }
  0x74   : > { %s992_s7 = sld [smem:[#allocation10 + $0x2]]  ;;  %s998_s9 = sld [smem:[#allocation10 + $0x3]] }
  0x75   : > { %v282_v1 = vstv %s281_s30  ;;  %s1000_s10 = sld [smem:[#allocation7 + $0x4]]  ;;  %v293_v4 = vstv %s524_s14  ;;  %s1007_s16 = sld [smem:[#allocation7 + $0x5]] }
  0x76   : > { %v283_v2 = vmul.f32 %v282_v1, %v988_v0  ;;  %v285_v3 = vstv %s284_s11  ;;  %s1003_s17 = sld [smem:[#allocation8 + $0x4]]  ;;  %v296_v5 = vstv %s525_s25  ;;  %s1009_s30 = sld [smem:[#allocation8 + $0x5]]  ;;  %v294_v7 = vmul.f32 %v293_v4, %v988_v0 }
  0x77   : > { %s1005_s18 = sld [smem:[#allocation10 + $0x4]]  ;;  %s1012_s0 = sld [smem:[#allocation7 + $0x6]]  ;;  %v289_v9 = vstv %s984_s13  ;;  %v300_v10 = vstv %s986_s15 }
  0x78   : > { %v286_v6 = vadd.f32 %v285_v3, %v283_v2  ;;  %v304_v8 = vstv %s527_s24  ;;  %s1018_s11 = sld [smem:[#allocation10 + $0x5]]  ;;  %s1020_s14 = sld [smem:[#allocation8 + $0x6]]  ;;  %v297_v14 = vadd.f32 %v296_v5, %v294_v7  ;;  %v315_v15 = vstv %s994_s6 }
  0x79   : > { %v305_v11 = vmul.f32 %v304_v8, %v988_v0  ;;  %v307_v12 = vstv %s990_s27  ;;  %v318_v16 = vstv %s996_s8  ;;  %s1024_s25 = sld [smem:[#allocation10 + $0x6]]  ;;  %s1026_s24 = sld [smem:[#allocation7 + $0x7]]  ;;  %v316_v19 = vmul.f32 %v315_v15, %v988_v0 }
  0x7a   : > { %v287_v13 = vmax.f32 %v286_v6, 0.0  ;;  %v311_v18 = vstv %s992_s7  ;;  %s1031_s13 = sld [smem:[#allocation8 + $0x7]]  ;;  %s1033_s15 = sld [smem:[#allocation7 + $0x8]]  ;;  %v298_v22 = vmax.f32 %v297_v14, 0.0  ;;  %v322_v27 = vstv %s998_s9 }
  0x7b   : > { %v308_v17 = vadd.f32 %v307_v12, %v305_v11  ;;  %v326_v20 = vstv %s1000_s10  ;;  %s1037_s27 = sld [smem:[#allocation10 + $0x7]]  ;;  %v319_v26 = vadd.f32 %v318_v16, %v316_v19  ;;  %v337_v28 = vstv %s1007_s16  ;;  %s1041_s7 = sld [smem:[#allocation8 + $0x8]] }
  0x7c   : > { %v290_v21 = vmul.f32 %v289_v9, %v287_v13  ;;  %v327_v23 = vmul.f32 %v326_v20, %v988_v0  ;;  %v329_v24 = vstv %s1003_s17  ;;  %s1043_s6 = sld [smem:[#allocation7 + $0x9]]  ;;  %v301_v29 = vmul.f32 %v300_v10, %v298_v22  ;;  %s1049_s8 = sld [smem:[#allocation10 + $0x8]] }
  0x7d   : > { %v309_v25 = vmax.f32 %v308_v17, 0.0  ;;  %v338_v31 = vmul.f32 %v337_v28, %v988_v0  ;;  %v340_v32 = vstv %s1009_s30  ;;  %v320_v34 = vmax.f32 %v319_v26, 0.0  ;;  %s1051_s16 = sld [smem:[#allocation8 + $0x9]]  ;;  %s1145_s10 = sshll.u32 %s966_s12, 3 }
  0x7e   : > { %v330_v30 = vadd.f32 %v329_v24, %v327_v23  ;;  %v333_v35 = vstv %s1005_s18  ;;  %v348_v36 = vstv %s1012_s0  ;;  %v302_v37 = vadd.f32 %v301_v29, %v290_v21  ;;  %s1057_s9 = sld [smem:[#allocation10 + $0x9]]  ;;  %s391_s0 = sld [smem:[#allocation2]] }
  0x7f   : > { %v312_v33 = vmul.f32 %v311_v18, %v309_v25  ;;  %v341_v39 = vadd.f32 %v340_v32, %v338_v31  ;;  %v349_v40 = vmul.f32 %v348_v36, %v988_v0  ;;  %v323_v41 = vmul.f32 %v322_v27, %v320_v34  ;;  %s279_s17 = scalar_lea.vmem [#allocation11], %s1145_s10  ;;  %s552_s30 = sshll.u32 %s842_s4, 7 }
  0x80   : > { %v331_v38 = vmax.f32 %v330_v30, 0.0  ;;  %v344_v42 = vstv %s1018_s11  ;;  %v351_v43 = vstv %s1020_s14  ;;  %v359_v44 = vstv %s1026_s24  ;;  %s409_s18 = sshll.u32 %s279_s17, 4  ;;  %s396_s24 = scalar_lea.sflag [#allocation5], %s966_s12  ;;  %s1074_s18 = int_to_ptr.vmem [resolvable:$true] %s409_s18 }
  0x81   : > { %v313_v45 = vadd.f32 %v312_v33, %v302_v37  ;;  %v342_v47 = vmax.f32 %v341_v39, 0.0  ;;  %v352_v48 = vadd.f32 %v351_v43, %v349_v40  ;;  %v355_v49 = vstv %s1024_s25  ;;  %s1079_s25 = scalar_lea.hbm %s1125_s5, %s552_s30  ;;  %s787_s4 = smov [#allocation11]  }
  0x82   : > { %v334_v46 = vmul.f32 %v333_v35, %v331_v38  ;;  %v360_v50 = vmul.f32 %v359_v44, %v988_v0  ;;  %v362_v51 = vstv %s1031_s13  ;;  %v370_v52 = vstv %s1033_s15  ;;  %s707_s13 = scalar_lea.vmem %s1074_s18, 128  ;;  %s711_s15 = sshll.u32 %s787_s4, 4  ;;  %s712_s15 = int_to_ptr.vmem [resolvable:$false] %s711_s15 }
  0x83   : > { %v324_v53 = vadd.f32 %v323_v41, %v313_v45  ;;  %v345_v54 = vmul.f32 %v344_v42, %v342_v47  ;;  %v353_v55 = vmax.f32 %v352_v48, 0.0  ;;  %v371_v56 = vmul.f32 %v370_v52, %v988_v0  ;;  %p708_p11 = scmp.ne.s32.totalorder %s1074_s18, %s707_s13  ;;  %p714_p2 = scmp.lt.s32.totalorder %s1074_s18, %s712_s15 }
  0x84   : > { %v363_v57 = vadd.f32 %v362_v51, %v360_v50  ;;  %v366_v58 = vstv %s1037_s27  ;;  %v373_v59 = vstv %s1041_s7  ;;  %v381_v60 = vstv %s1043_s6  ;;  %s713_s27 = scalar_lea.vmem %s712_s15, 256 }
  0x85   : > { %v335_v61 = vadd.f32 %v334_v46, %v324_v53  ;;  %v356_v62 = vmul.f32 %v355_v49, %v353_v55  ;;  %v374_v63 = vadd.f32 %v373_v59, %v371_v56  ;;  %v382_v1 = vmul.f32 %v381_v60, %v988_v0  ;;  %p709_p13 = pnand %p708_p11, %p921_p0  ;;  %p715_p4 = scmp.lt.s32.totalorder %s713_s27, %s707_s13 }
  0x86   : > { %v364_v2 = vmax.f32 %v363_v57, 0.0  ;;  %v377_v3 = vstv %s1049_s8  ;;  %v384_v4 = vstv %s1051_s16  ;;  %v388_v9 = vstv %s1057_s9 }
  0x87   : > { %v346_v5 = vadd.f32 %v345_v54, %v335_v61  ;;  %v375_v6 = vmax.f32 %v374_v63, 0.0  ;;  %v385_v7 = vadd.f32 %v384_v4, %v382_v1  ;;  %v392_v0 = vstv %s391_s0  ;;  %p710_p3 = pneg %p709_p13  ;;  %p716_p6 = por %p715_p4, %p714_p2 }
  0x88   : > { %v367_v8 = vmul.f32 %v366_v58, %v364_v2 }
  0x89   : > { %v357_v10 = vadd.f32 %v356_v62, %v346_v5  ;;  %v378_v11 = vmul.f32 %v377_v3, %v375_v6  ;;  %v386_v12 = vmax.f32 %v385_v7, 0.0  ;;  %p717_p8 = pnand %p716_p6, %p710_p3 }
  0x8b   : > { %v368_v13 = vadd.f32 %v367_v8, %v357_v10  ;;  %v389_v14 = vmul.f32 %v388_v9, %v386_v12 }
  0x8d   : > { %v379_v15 = vadd.f32 %v378_v11, %v368_v13 }
  0x8f   : > { %v390_v16 = vadd.f32 %v389_v14, %v379_v15 }
  0x91   : > { %v393_v17 = vadd.f32 %v392_v0, %v390_v16 }
  0x93   : > { %394 = vst [vmem:[%s279_s17] sm:$0xff] %v393_v17 }
  0x94   : > { %720 = shalt.err (!%p717_p8)
}
  0x95   : > { %s721_s12 = scalar_lea.hbm %s1079_s25, 128  ;;  %s725_s8 = scalar_lea.hbm %s1125_s5, 384 }
  0x96   : > { %p722_p5 = scmp.ne.s32.totalorder %s1079_s25, %s721_s12  ;;  %p726_p12 = scmp.lt.u32.totalorder %s1079_s25, %s1125_s5 }
  0x97   : > { %p727_p7 = scmp.lt.u32.totalorder %s725_s8, %s721_s12  ;;  %p729_p11 = scmp.lt.u32.totalorder %s721_s12, %s1079_s25 }
  0x98   : > { %p723_p1 = pnand %p722_p5, %p921_p0 }
  0x99   : > { %p728_p9 = por %p727_p7, %p726_p12 }
  0x9a   : > { %p724_p10 = pneg %p723_p1 }
  0x9b   : > { %p730_p13 = por %p729_p11, %p728_p9 }
  0x9d   : > { %p731_p3 = pnand %p730_p13, %p724_p10 }
  0x9f   : > { %734 = shalt.err (!%p731_p3)
}
  0xa0   : > { %569 = dma.vmem_to_hbm [thread:$0]  (%p921_p0), %s1074_s18, 128, %s1079_s25, %s396_s24  }
  0xa1 PF: > { %p596_p2 = scmp.ge.s32.totalorder %s781_s23, 2  ;;  %s421_s0 = sand.u32 1, %s769_s20  }
  0xa2   : > { %p1146_p4 = scmp.ne.s32.totalorder %s1132_s26, 0  ;;  %s422_s10 = scalar_lea.sflag [#allocation5], %s421_s0 }
  0xa4   : > { %p586_p6 = pnand %p596_p2, %p1146_p4 }
  0xa6   : > { %764 = dma.done.wait (!%p586_p6), %s422_s10, 128  }
  0xa7   : > { %766 = vsyncadd (!%p586_p6), %s422_s10, 4294967168  ;;  %p21_p8 = scmp.ge.s32.totalorder %s907_s19, 5   ;;  %s1147_s20 = smov %s773_s21 }
  0xa8   : > { %s1148_s21 = smov %s777_s22  ;;  %s1149_s22 = smov %s917_s28 }
  0xa9   : > { %s1150_s23 = smov %s907_s19  ;;  %23 = sbr.rel (!%p21_p8) target bundleno = 10 (0xa), region = 98 }
  0xb0   :  { %427 = vsyncpa [#allocation4], 1 }
  0xb1   :  { %429 = vsyncpa [#allocation4 + $0x1], 1 }
  0xb2   :  { %430 = vsyncpa [#allocation5], 1 }
  0xb3   :  { %432 = vsyncpa [#allocation5 + $0x1], 1 }
  0xb4   :  { %433 = vsyncpa [#allocation6], 1 }
  0xb5   :  { %435 = vsyncpa [#allocation6 + $0x1], 1 }
  0xb6   :  { %436 = vsyncpa [#allocation9], 1 }

</bundles_post_ra>
